<compile_context>
chip_gen: v6e
topology: v6e:2x2x1
jax: 0.10.0
libtpu: 0.0.40
codegen_flags: <defaults>
</compile_context>

<pallas_src>
import functools

import numpy as np

import jax
import jax.numpy as jnp
from jax.experimental import pallas as pl
from jax.experimental.pallas import tpu as pltpu


# ---------------------------------------------------------------------------
# Hardware-aware constants
# ---------------------------------------------------------------------------

def _vmem_params():
    """Return (double-buffered working-set budget, vmem_limit_bytes)."""
    phys = 64 << 20  # conservative default (v7x-sized VMEM)
    try:
        phys = int(pltpu.get_tpu_info().vmem_capacity_bytes)
    except Exception:  # info not available at trace time -> stay conservative
        pass
    if phys >= (128 << 20):          # v5e / v6e: 128 MiB physical VMEM
        return 32 << 20, 64 << 20
    return 20 << 20, 40 << 20        # v7x: 64 MiB physical VMEM


_VMEM_BUDGET_BYTES, _VMEM_LIMIT_BYTES = _vmem_params()
_MIN_PALLAS_BYTES = 512 * 1024       # below this, XLA's fused path wins
_LANE_CANDIDATES = (2048, 1024, 512, 256, 128)


def _sublane_quantum(itemsizes):
    """Sublane packing quantum: 8 for f32, 16 for bf16/f16, 32 for int8/fp8."""
    return max(8, 32 // max(1, min(itemsizes)))


def _cdiv(a, b):
    return -(-a // b)


# ---------------------------------------------------------------------------
# Kernels
# ---------------------------------------------------------------------------

def _tree_sum(terms):
    """Pairwise (tree) reduction -> exposes ILP across the 4 VALU slots."""
    while len(terms) > 1:
        nxt = [terms[i] + terms[i + 1] for i in range(0, len(terms) - 1, 2)]
        if len(terms) % 2:
            nxt.append(terms[-1])
        terms = nxt
    return terms[0]


def _combine_multi_kernel(*refs, alpha):
    """out = sum_k alpha[k] * x_k.float() for one (tn, L) tile.

    refs = (x0_ref, ..., x_{K-1}_ref, o_ref); alpha is a static tuple of
    Python floats, so the K-term axpy unrolls into fused VPU ops.
    """
    o_ref = refs[-1]
    terms = [a * r[...].astype(jnp.float32) for a, r in zip(alpha, refs[:-1])]
    o_ref[...] = _tree_sum(terms)


def _combine_stacked_kernel(x_ref, o_ref, *, alpha):
    """Same reduction, but the caller already has a stacked (K, tn, L) input."""
    terms = [a * x_ref[k].astype(jnp.float32) for k, a in enumerate(alpha)]
    o_ref[...] = _tree_sum(terms)


# ---------------------------------------------------------------------------
# Tiling / pallas_call wrappers
# ---------------------------------------------------------------------------

def _pick_tile_rows(rows, per_row_bytes, quantum):
    """Pick the tile row count tn (multiple of `quantum`).

    The grid uses cdiv(rows, tn) with a masked partial last block, so tn does
    NOT need to divide rows.  Returns None only if even the minimal tile blows
    the VMEM budget (caller falls back to plain jnp)."""
    max_rows = (_VMEM_BUDGET_BYTES // max(per_row_bytes, 1) // quantum) * quantum
    if max_rows < quantum:
        return None
    if rows <= quantum:
        return rows                       # single block == full dim (allowed)
    # Aim for >= 4 grid steps (>= 2 pipelined blocks per TC on v7x megacore).
    target = _cdiv(_cdiv(rows, 4), quantum) * quantum
    tn = min(max_rows, max(quantum, target))
    tn = min(tn, (rows // quantum) * quantum)
    return tn


def _pallas_combine_multi(alpha, parts_2d):
    """parts_2d: K arrays, all shape (rows, L).  Returns f32 (rows, L)."""
    rows, lane = parts_2d[0].shape
    k = len(parts_2d)
    itemsizes = [p.dtype.itemsize for p in parts_2d]
    # Double-buffered inputs + double-buffered f32 output, per block row.
    per_row = 2 * lane * (sum(itemsizes) + 4)
    tn = _pick_tile_rows(rows, per_row, _sublane_quantum(itemsizes))
    if tn is None:
        return None
    kernel = functools.partial(_combine_multi_kernel, alpha=alpha)
    return pl.pallas_call(
        kernel,
        out_shape=jax.ShapeDtypeStruct((rows, lane), jnp.float32),
        grid=(pl.cdiv(rows, tn),),
        in_specs=[pl.BlockSpec((tn, lane), lambda i: (i, 0)) for _ in range(k)],
        out_specs=pl.BlockSpec((tn, lane), lambda i: (i, 0)),
        compiler_params=pltpu.CompilerParams(
            dimension_semantics=("parallel",),
            vmem_limit_bytes=_VMEM_LIMIT_BYTES),
    )(*parts_2d)


def _pallas_combine_stacked(alpha, stacked_3d):
    """stacked_3d: (K, rows, L) (caller already stacked).  Returns f32 (rows, L)."""
    k, rows, lane = stacked_3d.shape
    itemsize = stacked_3d.dtype.itemsize
    per_row = 2 * lane * (k * itemsize + 4)
    tn = _pick_tile_rows(rows, per_row, _sublane_quantum([itemsize]))
    if tn is None:
        return None
    kernel = functools.partial(_combine_stacked_kernel, alpha=alpha)
    return pl.pallas_call(
        kernel,
        out_shape=jax.ShapeDtypeStruct((rows, lane), jnp.float32),
        grid=(pl.cdiv(rows, tn),),
        in_specs=[pl.BlockSpec((k, tn, lane), lambda i: (0, i, 0))],
        out_specs=pl.BlockSpec((tn, lane), lambda i: (i, 0)),
        compiler_params=pltpu.CompilerParams(
            dimension_semantics=("parallel",),
            vmem_limit_bytes=_VMEM_LIMIT_BYTES),
    )(stacked_3d)


def _lane_dense_layout(total_inner):
    """Largest lane width L (multiple of 128) that divides the element count."""
    for lane in _LANE_CANDIDATES:
        if total_inner >= lane and total_inner % lane == 0:
            return total_inner // lane, lane
    return None


# ---------------------------------------------------------------------------
# Module
# ---------------------------------------------------------------------------

class StaticAlphaCombine:
    """JAX/Pallas port of the PyTorch StaticAlphaCombine module.

    # TODO(synk): BaseModule config/NodePath plumbing, validate_params,
    # register_buffer and terminate() are framework glue with no Pallas
    # equivalent; only the forward-pass math is ported.
    """

    def __init__(self, alpha):
        alpha_np = np.asarray(alpha, dtype=np.float32).reshape(-1)
        a_sum = float(np.sum(np.abs(alpha_np)))
        if not np.isclose(a_sum, 1.0, rtol=1e-5, atol=1e-8):
            raise ValueError(f"alpha should sum to 1.0, but got {a_sum:.8f}")
        self.alpha_tuple = tuple(float(a) for a in alpha_np)   # static, baked into kernel
        self.alpha_const = jnp.asarray(alpha_np)               # for reference use
        self.len_alpha = int(alpha_np.shape[0])

    def __call__(self, *tensors, **_kwargs):
        return self.forward(*tensors)

    def forward(self, *tensors):
        if any(not isinstance(t, jax.Array) for t in tensors):
            raise TypeError("All the values in args should be jax arrays.")
        if len(tensors) > 1 and any(t.shape != tensors[0].shape for t in tensors):
            raise ValueError("The shapes of every tensor should match.")

        prestacked = len(tensors) == 1 and self.len_alpha != 1
        if prestacked:
            stacked = tensors[0]
            k = int(stacked.shape[0])
            inner_shape = tuple(int(d) for d in stacked.shape[1:])
            total_bytes = stacked.size * stacked.dtype.itemsize
        else:
            k = len(tensors)
            inner_shape = tuple(int(d) for d in tensors[0].shape)
            total_bytes = sum(t.size * t.dtype.itemsize for t in tensors)
        if k != self.len_alpha:
            raise ValueError(
                f"The length of the tensors {k} should equal the length of "
                f"alpha {self.len_alpha}")

        total_inner = int(np.prod(inner_shape)) if inner_shape else 1
        alpha = self.alpha_tuple

        out2d = None
        layout = _lane_dense_layout(total_inner) \
            if total_bytes >= _MIN_PALLAS_BYTES else None
        if layout is not None:
            rows, lane = layout
            if prestacked:
                out2d = _pallas_combine_stacked(
                    alpha, stacked.reshape(k, rows, lane))
            else:
                out2d = _pallas_combine_multi(
                    alpha, [t.reshape(rows, lane) for t in tensors])

        if out2d is None:
            # Small or 128-indivisible inputs: fused elementwise weighted sum
            # (reads each input exactly once; no tensordot f32 stack copy).
            if prestacked:
                out = sum(a * stacked[i].astype(jnp.float32)
                          for i, a in enumerate(alpha))
            else:
                out = sum(a * t.astype(jnp.float32)
                          for a, t in zip(alpha, tensors))
            return out.reshape(inner_shape)

        return out2d.reshape(inner_shape)


# ---------------------------------------------------------------------------
# Self-test
# ---------------------------------------------------------------------------

if __name__ == "__main__":
    key = jax.random.PRNGKey(0)
    k1, k2, k3 = jax.random.split(key, 3)

    module = StaticAlphaCombine(alpha=[0.5, 0.3, 0.2])

    def ref_combine(*parts):
        return jnp.tensordot(module.alpha_const,
                             jnp.stack(parts).astype(jnp.float32), axes=1)

    # --- Pallas path: three (N, M) f32 similarity matrices ------------------
    N, M = 256, 512
    s1 = jax.random.uniform(k1, (N, M), dtype=jnp.float32)
    s2 = jax.random.uniform(k2, (N, M), dtype=jnp.float32)
    s3 = jax.random.uniform(k3, (N, M), dtype=jnp.float32)
    out = jax.block_until_ready(module(s1, s2, s3))
    ref = ref_combine(s1, s2, s3)
    assert out.shape == (N, M) and out.dtype == jnp.float32
    assert jnp.allclose(out, ref, atol=1e-5, rtol=1e-5)

    # --- Pallas path: caller passes an already-stacked (K, N, M) tensor -----
    stacked = jnp.stack([s1, s2, s3])
    out_stacked = jax.block_until_ready(module(stacked))
    assert jnp.allclose(out_stacked, ref, atol=1e-5, rtol=1e-5)

    # --- Pallas path: rank-3, rows not divisible by the tile (masked tail) --
    r1 = jax.random.uniform(k1, (3, 100, 384), dtype=jnp.float32)
    r2 = jax.random.uniform(k2, (3, 100, 384), dtype=jnp.float32)
    r3 = jax.random.uniform(k3, (3, 100, 384), dtype=jnp.float32)
    out_r3 = jax.block_until_ready(module(r1, r2, r3))
    assert out_r3.shape == (3, 100, 384)
    assert jnp.allclose(out_r3, ref_combine(r1, r2, r3), atol=1e-5, rtol=1e-5)

    # --- Pallas path: bf16 inputs (sublane quantum 16) -----------------------
    b1 = jax.random.uniform(k1, (N, M), dtype=jnp.float32).astype(jnp.bfloat16)
    b2 = jax.random.uniform(k2, (N, M), dtype=jnp.float32).astype(jnp.bfloat16)
    b3 = jax.random.uniform(k3, (N, M), dtype=jnp.float32).astype(jnp.bfloat16)
    out_bf = jax.block_until_ready(module(b1, b2, b3))
    assert out_bf.dtype == jnp.float32
    assert jnp.allclose(out_bf, ref_combine(b1, b2, b3), atol=1e-5, rtol=1e-5)

    # --- Small-shape fallback path (fused jnp) --------------------------------
    t1 = jax.random.uniform(k1, (8, 40), dtype=jnp.float32)
    t2 = jax.random.uniform(k2, (8, 40), dtype=jnp.float32)
    t3 = jax.random.uniform(k3, (8, 40), dtype=jnp.float32)
    out_small = jax.block_until_ready(module(t1, t2, t3))
    assert jnp.allclose(out_small, ref_combine(t1, t2, t3), atol=1e-5, rtol=1e-5)

    print("KERNEL_OK")
</pallas_src>

<mosaic_0001>
module attributes {stable_mosaic.version = 11 : i64} {
  func.func @_combine_multi_kernel(%arg0: i32, %arg1: memref<16x2048xf32, #tpu.memory_space<vmem>>, %arg2: memref<16x2048xf32, #tpu.memory_space<vmem>>, %arg3: memref<16x2048xf32, #tpu.memory_space<vmem>>, %arg4: memref<16x2048xf32, #tpu.memory_space<vmem>>) attributes {dimension_semantics = [#tpu.dimension_semantics<parallel>], iteration_bounds = array<i64: 4>, scalar_prefetch = 0 : i64, scratch_operands = 0 : i64, tpu.core_type = #tpu.core_type<tc>, window_params = [{transform_indices = @transform_0, window_bounds = array<i64: 16, 2048>}, {transform_indices = @transform_1, window_bounds = array<i64: 16, 2048>}, {transform_indices = @transform_2, window_bounds = array<i64: 16, 2048>}, {transform_indices = @transform_3, window_bounds = array<i64: 16, 2048>}]} {
    %c0 = arith.constant 0 : index
    %c0_0 = arith.constant 0 : index
    %0 = vector.load %arg1[%c0, %c0_0] : memref<16x2048xf32, #tpu.memory_space<vmem>>, vector<16x2048xf32>
    %cst = arith.constant 5.000000e-01 : f32
    %1 = vector.broadcast %cst : f32 to vector<16x2048xf32>
    %2 = arith.mulf %1, %0 : vector<16x2048xf32>
    %c0_1 = arith.constant 0 : index
    %c0_2 = arith.constant 0 : index
    %3 = vector.load %arg2[%c0_1, %c0_2] : memref<16x2048xf32, #tpu.memory_space<vmem>>, vector<16x2048xf32>
    %cst_3 = arith.constant 3.000000e-01 : f32
    %4 = vector.broadcast %cst_3 : f32 to vector<16x2048xf32>
    %5 = arith.mulf %4, %3 : vector<16x2048xf32>
    %c0_4 = arith.constant 0 : index
    %c0_5 = arith.constant 0 : index
    %6 = vector.load %arg3[%c0_4, %c0_5] : memref<16x2048xf32, #tpu.memory_space<vmem>>, vector<16x2048xf32>
    %cst_6 = arith.constant 2.000000e-01 : f32
    %7 = vector.broadcast %cst_6 : f32 to vector<16x2048xf32>
    %8 = arith.mulf %7, %6 : vector<16x2048xf32>
    %9 = arith.addf %2, %5 : vector<16x2048xf32>
    %10 = arith.addf %9, %8 : vector<16x2048xf32>
    %c0_7 = arith.constant 0 : index
    %c0_8 = arith.constant 0 : index
    %11 = vector.load %arg4[%c0_7, %c0_8] : memref<16x2048xf32, #tpu.memory_space<vmem>>, vector<16x2048xf32>
    tpu.vector_store %arg4[%c0_7, %c0_8], %10 {strides = array<i32>} : memref<16x2048xf32, #tpu.memory_space<vmem>>, vector<16x2048xf32>,
    return
  }
  func.func @transform_0(%arg0: i32) -> (i32, i32) {
    %c0_i32 = arith.constant 0 : i32
    %c0_i32_0 = arith.constant 0 : i32
    return %arg0, %c0_i32 : i32, i32
  }
  func.func @transform_1(%arg0: i32) -> (i32, i32) {
    %c0_i32 = arith.constant 0 : i32
    %c0_i32_0 = arith.constant 0 : i32
    return %arg0, %c0_i32 : i32, i32
  }
  func.func @transform_2(%arg0: i32) -> (i32, i32) {
    %c0_i32 = arith.constant 0 : i32
    %c0_i32_0 = arith.constant 0 : i32
    return %arg0, %c0_i32 : i32, i32
  }
  func.func @transform_3(%arg0: i32) -> (i32, i32) {
    %c0_i32 = arith.constant 0 : i32
    %c0_i32_0 = arith.constant 0 : i32
    return %arg0, %c0_i32 : i32, i32
  }
}

</mosaic_0001>

<bundles_post_ra>
// kernel: tpu_custom_call.1
= control target key start
LH: loop header
LB: loop body
LE: loop exit
PB: predicated region body
PF: predicated region fallthrough
CT: control target
= control target key end

     0   :  { %s1351_s0 = inlined_call_operand.hbm [shape: f32[64,2048], index: 0, kind: input, shape index: {}]   ;;  %s1352_s1 = inlined_call_operand.hbm [shape: f32[64,2048], index: 1, kind: input, shape index: {}]   ;;  %s1353_s2 = inlined_call_operand.hbm [shape: f32[64,2048], index: 2, kind: input, shape index: {}]   ;;  %s1354_s3 = inlined_call_operand.hbm [shape: f32[64,2048], index: 3, kind: output, shape index: {}]  }
   0x1   :  { %1361 = sst [smem:[#allocation12_spill]] %s1351_s0 }
   0x2   :  { %1362 = sst [smem:[#allocation13_spill]] %s1352_s1 }
   0x3   :  { %8 = vsyncpa [#allocation3], 0 }
   0x4   :  { %10 = vsyncpa [#allocation3 + $0x1], 0 }
   0x5   :  { %11 = vsyncpa [#allocation6], 0 }
   0x6   :  { %13 = vsyncpa [#allocation6 + $0x1], 0 }
   0x7   :  { %14 = vsyncpa [#allocation4], 0 }
   0x8   :  { %16 = vsyncpa [#allocation4 + $0x1], 0  ;;  %s968_s12 = smov 0   ;;  %s970_s13 = smov 0  }
   0x9   :  { %s972_s14 = smov 0   ;;  %s974_s15 = smov 0  }
   0xa LB: > { %s989_s16 = sadd.s32 4294967295, %s938_s15   ;;  %s692_s17 = sadd.s32 4294967294, %s938_s15   ;;  %s938_s15 = sphi %s974_s15, %s1381_s15   ;;  %s934_s14 = sphi %s972_s14, %s1380_s14   ;;  %s930_s13 = sphi %s970_s13, %s1379_s13   ;;  %s926_s12 = sphi %s968_s12, %s1378_s12  }
   0xb   : > { %s993_s18 = sadd.s32 1, %s938_s15   ;;  %s29_s19 = sadd.s32 1, %s934_s14 }
   0xc   : > { %s26_s20 = ssub.s32 %s938_s15, %s993_s18  ;;  %p36_p0 = scmp.ne.s32.totalorder %s934_s14, %s930_s13 }
   0xd   : > { %p27_p1 = scmp.eq.s32.totalorder %s26_s20, 0  ;;  %p37_p2 = scmp.eq.s32.totalorder %s938_s15, 0 }
   0xe   : > { %p42_p3 = scmp.ne.s32.totalorder %s930_s13, %s926_s12  ;;  %p43_p4 = scmp.eq.s32.totalorder %s989_s16, 0 }
   0xf   : > { %s1005_s21 = scalar_select %p27_p1, %s934_s14, %s29_s19  }
  0x10   : > { %p38_p5 = por %p37_p2, %p36_p0  ;;  %p1007_p6 = por %p43_p4, %p42_p3 }
  0x11   : > { %p118_p7 = scmp.eq.s32.totalorder %s989_s16, 3  ;;  %p124_p8 = scmp.eq.s32.totalorder %s692_s17, 3 }
  0x12   : > { %s1363_s22 = scalar_select %p1007_p6, 1, 0 }
  0x13   : > { %p748_p9 = scmp.lt.s32.totalorder %s938_s15, 4  ;;  %p1013_p10 = por %p118_p7, %p36_p0 }
  0x14   : > { %p1017_p11 = por %p124_p8, %p42_p3  ;;  %s144_s25 = sand.u32 1, %s934_s14  }
  0x15   : > { %s1364_s23 = scalar_select %p1013_p10, 1, 0 }
  0x16   : > { %s1365_s24 = scalar_select %p1017_p11, 1, 0 }
  0x17   : > { %s1023_s26 = sshll.u32 %s938_s15, 12  ;;  %s1027_s27 = sshll.u32 %s144_s25, 8 }
  0x18   : > { %p1029_p12 = pnand %p748_p9, %p38_p5  ;;  %s166_s29 = sand.u32 1, %s938_s15  }
  0x19   : > { %s1367_s1 = sld [smem:[#allocation13_spill]]  ;;  %s170_s6 = scalar_lea.vmem [#allocation5], %s1027_s27 }
  0x1a   : > { %s178_s7 = sshll.u32 %s170_s6, 4  ;;  %s1044_s8 = scalar_lea.sflag [#allocation6], %s166_s29  ;;  %s1041_s7 = int_to_ptr.vmem [resolvable:$true] %s178_s7 }
  0x1b   : > { %p1050_p1 = pneg %p1029_p12 }
  0x1f   : > { %s1038_s5 = scalar_lea.hbm %s1367_s1, %s1023_s26  ;;  %s791_s19 = scalar_lea.hbm %s1367_s1, 16384 }
  0x20   : > { %s786_s9 = scalar_lea.hbm %s1038_s5, 4096  ;;  %p792_p4 = scmp.lt.s32.totalorder %s1038_s5, %s1367_s1 }
  0x21   : > { %p787_p0 = scmp.ne.s32.totalorder %s1038_s5, %s786_s9  ;;  %p793_p5 = scmp.lt.s32.totalorder %s791_s19, %s786_s9 }
  0x23   : > { %p789_p2 = pnand %p1050_p1, %p787_p0  ;;  %p794_p7 = por %p793_p5, %p792_p4 }
  0x25   : > { %p790_p3 = pneg %p789_p2 }
  0x27   : > { %p795_p8 = pnand %p794_p7, %p790_p3 }
  0x29   : > { %798 = shalt.err (!%p795_p8)
}
  0x2a   : > { %s799_s29 = scalar_lea.vmem %s1041_s7, 4096  ;;  %s940_s4 = smov [#allocation5]  }
  0x2b   : > { %p800_p9 = scmp.ne.s32.totalorder %s1041_s7, %s799_s29  ;;  %s804_s6 = sshll.u32 %s940_s4, 4  ;;  %s805_s6 = int_to_ptr.vmem [resolvable:$false] %s804_s6 }
  0x2c   : > { %s806_s11 = scalar_lea.vmem %s805_s6, 8192  ;;  %p807_p13 = scmp.lt.s32.totalorder %s1041_s7, %s805_s6 }
  0x2d   : > { %p802_p0 = pnand %p800_p9, %p1050_p1  ;;  %p808_p11 = scmp.lt.s32.totalorder %s806_s11, %s799_s29 }
  0x2f   : > { %p803_p2 = pneg %p802_p0  ;;  %p809_p10 = por %p808_p11, %p807_p13 }
  0x31   : > { %p810_p6 = pnand %p809_p10, %p803_p2 }
  0x33   : > { %813 = shalt.err (!%p810_p6)
}
  0x34   : > { %s1357_s9 = smov 2048   ;;  %s1359_s17 = smov 128  }
  0x35   : > { %740 = dma.hbm_to_vmem [thread:$0]  (!%p1029_p12), %s1038_s5, 4096, %s1041_s7, %s1044_s8, %s1357_s9, %s1357_s9, %s1359_s17  }
  0x36   : > { %p208_p11 = scmp.lt.s32.totalorder %s938_s15, 5  ;;  %s1369_s0 = sld [smem:[#allocation12_spill]] }
  0x37   : > { %p1370_p6 = scmp.ge.s32.totalorder %s938_s15, 1  ;;  %s148_s4 = scalar_lea.vmem [#allocation2], %s1027_s27 }
  0x38   : > { %s156_s6 = sshll.u32 %s148_s4, 4  ;;  %s145_s5 = scalar_lea.sflag [#allocation3], %s144_s25  ;;  %s1090_s6 = int_to_ptr.vmem [resolvable:$true] %s156_s6 }
  0x39   : > { %p1085_p10 = pnand %p1370_p6, %p208_p11 }
  0x3b   : > { %s1371_s29 = scalar_select %p1085_p10, 1, 0 }
  0x3c   : > { %s1081_s30 = scalar_lea.hbm %s1369_s0, %s1023_s26  ;;  %s819_s20 = scalar_lea.hbm %s1369_s0, 16384 }
  0x3d   : > { %s814_s7 = scalar_lea.hbm %s1081_s30, 4096  ;;  %p820_p5 = scmp.lt.s32.totalorder %s1081_s30, %s1369_s0 }
  0x3e   : > { %p815_p13 = scmp.ne.s32.totalorder %s1081_s30, %s814_s7  ;;  %p821_p7 = scmp.lt.s32.totalorder %s819_s20, %s814_s7 }
  0x40   : > { %p817_p3 = pnand %p815_p13, %p1050_p1  ;;  %p822_p8 = por %p821_p7, %p820_p5 }
  0x42   : > { %p818_p4 = pneg %p817_p3 }
  0x44   : > { %p823_p9 = pnand %p822_p8, %p818_p4 }
  0x46   : > { %826 = shalt.err (!%p823_p9)
}
  0x47   : > { %s827_s25 = scalar_lea.vmem %s1090_s6, 4096  ;;  %s943_s4 = smov [#allocation2]  }
  0x48   : > { %p828_p0 = scmp.ne.s32.totalorder %s1090_s6, %s827_s25  ;;  %s832_s11 = sshll.u32 %s943_s4, 4  ;;  %s833_s11 = int_to_ptr.vmem [resolvable:$false] %s832_s11 }
  0x49   : > { %s834_s19 = scalar_lea.vmem %s833_s11, 8192  ;;  %p835_p6 = scmp.lt.s32.totalorder %s1090_s6, %s833_s11 }
  0x4a   : > { %p830_p2 = pnand %p828_p0, %p1050_p1  ;;  %p836_p13 = scmp.lt.s32.totalorder %s834_s19, %s827_s25 }
  0x4c   : > { %p831_p11 = pneg %p830_p2  ;;  %p837_p3 = por %p836_p13, %p835_p6 }
  0x4e   : > { %p838_p10 = pnand %p837_p3, %p831_p11 }
  0x50   : > { %841 = shalt.err (!%p838_p10)
}
  0x51   : > { %s1372_s9 = smov 128   ;;  %s1373_s17 = smov 2048  }
  0x52   : > { %737 = dma.hbm_to_vmem [thread:$0]  (!%p1029_p12), %s1081_s30, 4096, %s1090_s6, %s145_s5, %s1373_s17, %s1373_s17, %s1372_s9  }
  0x53   : > { %s1121_s4 = scalar_lea.hbm %s1353_s2, %s1023_s26  ;;  %s192_s25 = scalar_lea.vmem [#allocation7], %s1027_s27 }
  0x54   : > { %s200_s11 = sshll.u32 %s192_s25, 4  ;;  %s842_s19 = scalar_lea.hbm %s1121_s4, 4096  ;;  %s201_s11 = int_to_ptr.vmem [resolvable:$true] %s200_s11 }
  0x55   : > { %p843_p10 = scmp.ne.s32.totalorder %s1121_s4, %s842_s19  ;;  %s847_s30 = scalar_lea.hbm %s1353_s2, 16384 }
  0x56   : > { %p848_p7 = scmp.lt.s32.totalorder %s1121_s4, %s1353_s2  ;;  %p849_p8 = scmp.lt.s32.totalorder %s847_s30, %s842_s19 }
  0x57   : > { %p845_p4 = pnand %p843_p10, %p1050_p1 }
  0x58   : > { %p850_p9 = por %p849_p8, %p848_p7 }
  0x59   : > { %p846_p5 = pneg %p845_p4 }
  0x5b   : > { %p851_p0 = pnand %p850_p9, %p846_p5 }
  0x5d   : > { %854 = shalt.err (!%p851_p0)
}
  0x5e   : > { %s855_s26 = scalar_lea.vmem %s201_s11, 4096  ;;  %s944_s27 = smov [#allocation7]  }
  0x5f   : > { %p856_p2 = scmp.ne.s32.totalorder %s201_s11, %s855_s26  ;;  %s860_s7 = sshll.u32 %s944_s27, 4  ;;  %s861_s7 = int_to_ptr.vmem [resolvable:$false] %s860_s7 }
  0x60   : > { %s862_s20 = scalar_lea.vmem %s861_s7, 8192  ;;  %p863_p13 = scmp.lt.s32.totalorder %s201_s11, %s861_s7 }
  0x61   : > { %p858_p11 = pnand %p856_p2, %p1050_p1  ;;  %p864_p3 = scmp.lt.s32.totalorder %s862_s20, %s855_s26 }
  0x63   : > { %p859_p6 = pneg %p858_p11  ;;  %p865_p10 = por %p864_p3, %p863_p13 }
  0x65   : > { %p866_p4 = pnand %p865_p10, %p859_p6 }
  0x67   : > { %869 = shalt.err (!%p866_p4)
}
  0x68   : > { %743 = dma.hbm_to_vmem [thread:$0]  (!%p1029_p12), %s1121_s4, 4096, %s201_s11, %s1044_s8, %s1373_s17, %s1373_s17, %s1372_s9  }
  0x69   : > { %p1374_p1 = scmp.ne.s32.totalorder %s1371_s29, 0 }
  0x6a   : > { %s1147_s0 = sand.u32 (!%p1374_p1), 1, %s930_s13   ;;  %p1375_p5 = scmp.ne.s32.totalorder (!%p1374_p1), %s1363_s22, 0 }
  0x6b   : > { %212 = sbr.rel (%p1374_p1) target bundleno = 185 (0xb9), region = 32  ;;  %s1150_s1 = sshll.u32 (!%p1374_p1), %s1147_s0, 8 }
  0x6c   : > { %s215_s10 = scalar_lea.sflag (!%p1374_p1), [#allocation3], %s1147_s0  ;;  %s1154_s28 = scalar_lea.vmem (!%p1374_p1), [#allocation2], %s1150_s1 }
  0x70   : > { %913 = dma.done.wait (%p1375_p5), %s215_s10, 4096  }
  0x71   : > { %915 = vsyncadd (%p1375_p5), %s215_s10, 4294963200  ;;  %s223_s8 = sand.u32 1, %s989_s16   ;;  %s1162_s9 = scalar_lea.vmem [#allocation5], %s1150_s1 }
  0x72   : > { %s224_s29 = scalar_lea.sflag [#allocation6], %s223_s8 }
  0x73   : > { %917 = dma.done.wait (%p1375_p5), %s224_s29, 8192  }
  0x74   : > { %919 = vsyncadd (%p1375_p5), %s224_s29, 4294959104  ;;  %v273_v0 = vld [vmem:[%s1154_s28] sm:$0xff]  ;;  %s1171_s17 = scalar_lea.vmem [#allocation7], %s1150_s1  ;;  %v274_v6 = vld [vmem:[%s1154_s28 + $0x8] sm:$0xff]  ;;  %s1187_s22 = scalar_lea.vmem [#allocation8], %s1150_s1 }
  0x75   : > { %v337_v1 = vld [vmem:[%s1162_s9] sm:$0xff]  ;;  %v305_v3 = vmul.f32 0.5, %v273_v0  ;;  %v306_v7 = vmul.f32 0.5, %v274_v6  ;;  %v338_v8 = vld [vmem:[%s1162_s9 + $0x8] sm:$0xff]  ;;  %v275_v10 = vld [vmem:[%s1154_s28 + $0x10] sm:$0xff]  ;;  %s725_s4 = sshll.u32 %s989_s16, 12 }
  0x76   : > { %v401_v2 = vld [vmem:[%s1171_s17] sm:$0xff]  ;;  %v369_v4 = vmul.f32 0.3, %v337_v1  ;;  %v402_v9 = vld [vmem:[%s1171_s17 + $0x8] sm:$0xff]  ;;  %v370_v12 = vmul.f32 0.3, %v338_v8  ;;  %s1305_s30 = scalar_lea.hbm %s1354_s3, %s725_s4 }
  0x77   : > { %v433_v5 = vmul.f32 0.2, %v401_v2  ;;  %v434_v13 = vmul.f32 0.2, %v402_v9  ;;  %v307_v14 = vmul.f32 0.5, %v275_v10  ;;  %v339_v15 = vld [vmem:[%s1162_s9 + $0x10] sm:$0xff] }
  0x78   : > { %v465_v11 = vadd.f32 %v369_v4, %v305_v3  ;;  %v371_v16 = vmul.f32 0.3, %v339_v15  ;;  %v403_v17 = vld [vmem:[%s1171_s17 + $0x10] sm:$0xff]  ;;  %v276_v18 = vld [vmem:[%s1154_s28 + $0x18] sm:$0xff]  ;;  %v466_v21 = vadd.f32 %v370_v12, %v306_v7  ;;  %v277_v25 = vld [vmem:[%s1154_s28 + $0x20] sm:$0xff]  ;;  %s576_s25 = sshll.u32 %s1187_s22, 4  ;;  %s1307_s25 = int_to_ptr.vmem [resolvable:$true] %s576_s25 }
  0x79   : > { %v340_v19 = vld [vmem:[%s1162_s9 + $0x18] sm:$0xff]  ;;  %v435_v22 = vmul.f32 0.2, %v403_v17  ;;  %v308_v23 = vmul.f32 0.5, %v276_v18  ;;  %v341_v26 = vld [vmem:[%s1162_s9 + $0x20] sm:$0xff]  ;;  %v309_v30 = vmul.f32 0.5, %v277_v25 }
  0x7a   : > { %v497_v20 = vadd.f32 %v465_v11, %v433_v5  ;;  %v404_v24 = vld [vmem:[%s1171_s17 + $0x18] sm:$0xff]  ;;  %v467_v27 = vadd.f32 %v371_v16, %v307_v14  ;;  %v372_v28 = vmul.f32 0.3, %v340_v19  ;;  %v405_v31 = vld [vmem:[%s1171_s17 + $0x20] sm:$0xff]  ;;  %v498_v32 = vadd.f32 %v466_v21, %v434_v13  ;;  %v278_v35 = vld [vmem:[%s1154_s28 + $0x28] sm:$0xff]  ;;  %s562_s16 = scalar_lea.sflag [#allocation4], %s1147_s0 }
  0x7b   : > { %v436_v29 = vmul.f32 0.2, %v404_v24  ;;  %v373_v33 = vmul.f32 0.3, %v341_v26  ;;  %v437_v34 = vmul.f32 0.2, %v405_v31 }
  0x7c   : > { %529 = vst [vmem:[%s1187_s22] sm:$0xff] %v497_v20  ;;  %v342_v36 = vld [vmem:[%s1162_s9 + $0x28] sm:$0xff]  ;;  %v499_v37 = vadd.f32 %v467_v27, %v435_v22  ;;  %v468_v38 = vadd.f32 %v372_v28, %v308_v23  ;;  %v310_v39 = vmul.f32 0.5, %v278_v35  ;;  %v279_v42 = vld [vmem:[%s1154_s28 + $0x30] sm:$0xff]  ;;  %530 = vst [vmem:[%s1187_s22 + $0x8] sm:$0xff] %v498_v32  ;;  %s870_s6 = scalar_lea.vmem %s1307_s25, 4096  ;;  %p1376_p7 = scmp.ne.s32.totalorder %s1364_s23, 0 }
  0x7d   : > { %v374_v40 = vmul.f32 0.3, %v342_v36  ;;  %v406_v41 = vld [vmem:[%s1171_s17 + $0x28] sm:$0xff]  ;;  %v343_v43 = vld [vmem:[%s1162_s9 + $0x30] sm:$0xff]  ;;  %v469_v44 = vadd.f32 %v373_v33, %v309_v30  ;;  %v311_v46 = vmul.f32 0.5, %v279_v42  ;;  %v280_v52 = vld [vmem:[%s1154_s28 + $0x38] sm:$0xff]  ;;  %p871_p12 = scmp.ne.s32.totalorder %s1307_s25, %s870_s6 }
  0x7e   : > { %v438_v45 = vmul.f32 0.2, %v406_v41  ;;  %v375_v47 = vmul.f32 0.3, %v343_v43  ;;  %v407_v48 = vld [vmem:[%s1171_s17 + $0x30] sm:$0xff]  ;;  %531 = vst [vmem:[%s1187_s22 + $0x10] sm:$0xff] %v499_v37  ;;  %v500_v49 = vadd.f32 %v468_v38, %v436_v29 }
  0x7f   : > { %v470_v50 = vadd.f32 %v374_v40, %v310_v39  ;;  %v439_v51 = vmul.f32 0.2, %v407_v48  ;;  %v344_v53 = vld [vmem:[%s1162_s9 + $0x38] sm:$0xff]  ;;  %v501_v55 = vadd.f32 %v469_v44, %v437_v34  ;;  %v312_v57 = vmul.f32 0.5, %v280_v52  ;;  %v281_v59 = vld [vmem:[%s1154_s28 + $0x40] sm:$0xff]  ;;  %v282_v2 = vld [vmem:[%s1154_s28 + $0x48] sm:$0xff]  ;;  %p872_p8 = pnand %p871_p12, %p1376_p7 }
  0x80   : > { %v408_v54 = vld [vmem:[%s1171_s17 + $0x38] sm:$0xff]  ;;  %v471_v56 = vadd.f32 %v375_v47, %v311_v46  ;;  %v376_v58 = vmul.f32 0.3, %v344_v53  ;;  %v345_v60 = vld [vmem:[%s1162_s9 + $0x40] sm:$0xff]  ;;  %532 = vst [vmem:[%s1187_s22 + $0x18] sm:$0xff] %v500_v49  ;;  %v313_v0 = vmul.f32 0.5, %v281_v59 }
  0x81   : > { %v409_v61 = vld [vmem:[%s1171_s17 + $0x40] sm:$0xff]  ;;  %v502_v62 = vadd.f32 %v470_v50, %v438_v45  ;;  %v440_v63 = vmul.f32 0.2, %v408_v54  ;;  %v377_v1 = vmul.f32 0.3, %v345_v60  ;;  %533 = vst [vmem:[%s1187_s22 + $0x20] sm:$0xff] %v501_v55  ;;  %p873_p9 = pneg %p872_p8 }
  0x82   : > { %v503_v3 = vadd.f32 %v471_v56, %v439_v51  ;;  %v472_v4 = vadd.f32 %v376_v58, %v312_v57  ;;  %v441_v5 = vmul.f32 0.2, %v409_v61  ;;  %v314_v6 = vmul.f32 0.5, %v282_v2  ;;  %v346_v7 = vld [vmem:[%s1162_s9 + $0x48] sm:$0xff]  ;;  %v283_v9 = vld [vmem:[%s1154_s28 + $0x50] sm:$0xff]  ;;  %v284_v18 = vld [vmem:[%s1154_s28 + $0x58] sm:$0xff] }
  0x83   : > { %v410_v8 = vld [vmem:[%s1171_s17 + $0x48] sm:$0xff]  ;;  %534 = vst [vmem:[%s1187_s22 + $0x28] sm:$0xff] %v502_v62  ;;  %v473_v10 = vadd.f32 %v377_v1, %v313_v0  ;;  %v378_v11 = vmul.f32 0.3, %v346_v7  ;;  %v315_v13 = vmul.f32 0.5, %v283_v9  ;;  %v347_v14 = vld [vmem:[%s1162_s9 + $0x50] sm:$0xff] }
  0x84   : > { %v442_v12 = vmul.f32 0.2, %v410_v8  ;;  %535 = vst [vmem:[%s1187_s22 + $0x30] sm:$0xff] %v503_v3  ;;  %v504_v15 = vadd.f32 %v472_v4, %v440_v63  ;;  %v379_v16 = vmul.f32 0.3, %v347_v14  ;;  %v411_v17 = vld [vmem:[%s1171_s17 + $0x50] sm:$0xff] }
  0x85   : > { %v348_v19 = vld [vmem:[%s1162_s9 + $0x58] sm:$0xff]  ;;  %v505_v20 = vadd.f32 %v473_v10, %v441_v5  ;;  %v474_v21 = vadd.f32 %v378_v11, %v314_v6  ;;  %v443_v22 = vmul.f32 0.2, %v411_v17  ;;  %v316_v23 = vmul.f32 0.5, %v284_v18  ;;  %v285_v25 = vld [vmem:[%s1154_s28 + $0x60] sm:$0xff]  ;;  %v286_v35 = vld [vmem:[%s1154_s28 + $0x68] sm:$0xff] }
  0x86   : > { %v412_v24 = vld [vmem:[%s1171_s17 + $0x58] sm:$0xff]  ;;  %v349_v26 = vld [vmem:[%s1162_s9 + $0x60] sm:$0xff]  ;;  %536 = vst [vmem:[%s1187_s22 + $0x38] sm:$0xff] %v504_v15  ;;  %v475_v27 = vadd.f32 %v379_v16, %v315_v13  ;;  %v380_v28 = vmul.f32 0.3, %v348_v19  ;;  %v317_v30 = vmul.f32 0.5, %v285_v25 }
  0x87   : > { %v444_v29 = vmul.f32 0.2, %v412_v24  ;;  %v413_v31 = vld [vmem:[%s1171_s17 + $0x60] sm:$0xff]  ;;  %537 = vst [vmem:[%s1187_s22 + $0x40] sm:$0xff] %v505_v20  ;;  %v506_v32 = vadd.f32 %v474_v21, %v442_v12  ;;  %v381_v33 = vmul.f32 0.3, %v349_v26 }
  0x88   : > { %v445_v34 = vmul.f32 0.2, %v413_v31  ;;  %v350_v36 = vld [vmem:[%s1162_s9 + $0x68] sm:$0xff]  ;;  %v507_v37 = vadd.f32 %v475_v27, %v443_v22  ;;  %v476_v38 = vadd.f32 %v380_v28, %v316_v23  ;;  %v318_v39 = vmul.f32 0.5, %v286_v35  ;;  %v287_v42 = vld [vmem:[%s1154_s28 + $0x70] sm:$0xff]  ;;  %v288_v52 = vld [vmem:[%s1154_s28 + $0x78] sm:$0xff] }
  0x89   : > { %v382_v40 = vmul.f32 0.3, %v350_v36  ;;  %v414_v41 = vld [vmem:[%s1171_s17 + $0x68] sm:$0xff]  ;;  %v351_v43 = vld [vmem:[%s1162_s9 + $0x70] sm:$0xff]  ;;  %538 = vst [vmem:[%s1187_s22 + $0x48] sm:$0xff] %v506_v32  ;;  %v477_v44 = vadd.f32 %v381_v33, %v317_v30  ;;  %v319_v46 = vmul.f32 0.5, %v287_v42 }
  0x8a   : > { %v446_v45 = vmul.f32 0.2, %v414_v41  ;;  %v383_v47 = vmul.f32 0.3, %v351_v43  ;;  %v415_v48 = vld [vmem:[%s1171_s17 + $0x70] sm:$0xff]  ;;  %539 = vst [vmem:[%s1187_s22 + $0x50] sm:$0xff] %v507_v37  ;;  %v508_v49 = vadd.f32 %v476_v38, %v444_v29 }
  0x8b   : > { %v478_v50 = vadd.f32 %v382_v40, %v318_v39  ;;  %v447_v51 = vmul.f32 0.2, %v415_v48  ;;  %v352_v53 = vld [vmem:[%s1162_s9 + $0x78] sm:$0xff]  ;;  %v509_v55 = vadd.f32 %v477_v44, %v445_v34  ;;  %v320_v57 = vmul.f32 0.5, %v288_v52  ;;  %v289_v59 = vld [vmem:[%s1154_s28 + $0x80] sm:$0xff]  ;;  %v290_v2 = vld [vmem:[%s1154_s28 + $0x88] sm:$0xff] }
  0x8c   : > { %v416_v54 = vld [vmem:[%s1171_s17 + $0x78] sm:$0xff]  ;;  %v479_v56 = vadd.f32 %v383_v47, %v319_v46  ;;  %v384_v58 = vmul.f32 0.3, %v352_v53  ;;  %v353_v60 = vld [vmem:[%s1162_s9 + $0x80] sm:$0xff]  ;;  %540 = vst [vmem:[%s1187_s22 + $0x58] sm:$0xff] %v508_v49  ;;  %v321_v0 = vmul.f32 0.5, %v289_v59 }
  0x8d   : > { %v417_v61 = vld [vmem:[%s1171_s17 + $0x80] sm:$0xff]  ;;  %v510_v62 = vadd.f32 %v478_v50, %v446_v45  ;;  %v448_v63 = vmul.f32 0.2, %v416_v54  ;;  %v385_v1 = vmul.f32 0.3, %v353_v60  ;;  %541 = vst [vmem:[%s1187_s22 + $0x60] sm:$0xff] %v509_v55 }
  0x8e   : > { %v511_v3 = vadd.f32 %v479_v56, %v447_v51  ;;  %v480_v4 = vadd.f32 %v384_v58, %v320_v57  ;;  %v449_v5 = vmul.f32 0.2, %v417_v61  ;;  %v322_v6 = vmul.f32 0.5, %v290_v2  ;;  %v354_v7 = vld [vmem:[%s1162_s9 + $0x88] sm:$0xff]  ;;  %v291_v9 = vld [vmem:[%s1154_s28 + $0x90] sm:$0xff]  ;;  %v292_v18 = vld [vmem:[%s1154_s28 + $0x98] sm:$0xff] }
  0x8f   : > { %v418_v8 = vld [vmem:[%s1171_s17 + $0x88] sm:$0xff]  ;;  %542 = vst [vmem:[%s1187_s22 + $0x68] sm:$0xff] %v510_v62  ;;  %v481_v10 = vadd.f32 %v385_v1, %v321_v0  ;;  %v386_v11 = vmul.f32 0.3, %v354_v7  ;;  %v323_v13 = vmul.f32 0.5, %v291_v9  ;;  %v355_v14 = vld [vmem:[%s1162_s9 + $0x90] sm:$0xff] }
  0x90   : > { %v450_v12 = vmul.f32 0.2, %v418_v8  ;;  %543 = vst [vmem:[%s1187_s22 + $0x70] sm:$0xff] %v511_v3  ;;  %v512_v15 = vadd.f32 %v480_v4, %v448_v63  ;;  %v387_v16 = vmul.f32 0.3, %v355_v14  ;;  %v419_v17 = vld [vmem:[%s1171_s17 + $0x90] sm:$0xff] }
  0x91   : > { %v356_v19 = vld [vmem:[%s1162_s9 + $0x98] sm:$0xff]  ;;  %v513_v20 = vadd.f32 %v481_v10, %v449_v5  ;;  %v482_v21 = vadd.f32 %v386_v11, %v322_v6  ;;  %v451_v22 = vmul.f32 0.2, %v419_v17  ;;  %v324_v23 = vmul.f32 0.5, %v292_v18  ;;  %v293_v25 = vld [vmem:[%s1154_s28 + $0xa0] sm:$0xff]  ;;  %v294_v35 = vld [vmem:[%s1154_s28 + $0xa8] sm:$0xff] }
  0x92   : > { %v420_v24 = vld [vmem:[%s1171_s17 + $0x98] sm:$0xff]  ;;  %v357_v26 = vld [vmem:[%s1162_s9 + $0xa0] sm:$0xff]  ;;  %544 = vst [vmem:[%s1187_s22 + $0x78] sm:$0xff] %v512_v15  ;;  %v483_v27 = vadd.f32 %v387_v16, %v323_v13  ;;  %v388_v28 = vmul.f32 0.3, %v356_v19  ;;  %v325_v30 = vmul.f32 0.5, %v293_v25 }
  0x93   : > { %v452_v29 = vmul.f32 0.2, %v420_v24  ;;  %v421_v31 = vld [vmem:[%s1171_s17 + $0xa0] sm:$0xff]  ;;  %545 = vst [vmem:[%s1187_s22 + $0x80] sm:$0xff] %v513_v20  ;;  %v514_v32 = vadd.f32 %v482_v21, %v450_v12  ;;  %v389_v33 = vmul.f32 0.3, %v357_v26 }
  0x94   : > { %v453_v34 = vmul.f32 0.2, %v421_v31  ;;  %v358_v36 = vld [vmem:[%s1162_s9 + $0xa8] sm:$0xff]  ;;  %v515_v37 = vadd.f32 %v483_v27, %v451_v22  ;;  %v484_v38 = vadd.f32 %v388_v28, %v324_v23  ;;  %v326_v39 = vmul.f32 0.5, %v294_v35  ;;  %v295_v42 = vld [vmem:[%s1154_s28 + $0xb0] sm:$0xff]  ;;  %v296_v52 = vld [vmem:[%s1154_s28 + $0xb8] sm:$0xff] }
  0x95   : > { %v390_v40 = vmul.f32 0.3, %v358_v36  ;;  %v422_v41 = vld [vmem:[%s1171_s17 + $0xa8] sm:$0xff]  ;;  %v359_v43 = vld [vmem:[%s1162_s9 + $0xb0] sm:$0xff]  ;;  %546 = vst [vmem:[%s1187_s22 + $0x88] sm:$0xff] %v514_v32  ;;  %v485_v44 = vadd.f32 %v389_v33, %v325_v30  ;;  %v327_v46 = vmul.f32 0.5, %v295_v42 }
  0x96   : > { %v454_v45 = vmul.f32 0.2, %v422_v41  ;;  %v391_v47 = vmul.f32 0.3, %v359_v43  ;;  %v423_v48 = vld [vmem:[%s1171_s17 + $0xb0] sm:$0xff]  ;;  %547 = vst [vmem:[%s1187_s22 + $0x90] sm:$0xff] %v515_v37  ;;  %v516_v49 = vadd.f32 %v484_v38, %v452_v29 }
  0x97   : > { %v486_v50 = vadd.f32 %v390_v40, %v326_v39  ;;  %v455_v51 = vmul.f32 0.2, %v423_v48  ;;  %v360_v53 = vld [vmem:[%s1162_s9 + $0xb8] sm:$0xff]  ;;  %v517_v55 = vadd.f32 %v485_v44, %v453_v34  ;;  %v328_v57 = vmul.f32 0.5, %v296_v52  ;;  %v297_v59 = vld [vmem:[%s1154_s28 + $0xc0] sm:$0xff]  ;;  %v298_v2 = vld [vmem:[%s1154_s28 + $0xc8] sm:$0xff] }
  0x98   : > { %v424_v54 = vld [vmem:[%s1171_s17 + $0xb8] sm:$0xff]  ;;  %v487_v56 = vadd.f32 %v391_v47, %v327_v46  ;;  %v392_v58 = vmul.f32 0.3, %v360_v53  ;;  %v361_v60 = vld [vmem:[%s1162_s9 + $0xc0] sm:$0xff]  ;;  %548 = vst [vmem:[%s1187_s22 + $0x98] sm:$0xff] %v516_v49  ;;  %v329_v0 = vmul.f32 0.5, %v297_v59 }
  0x99   : > { %v425_v61 = vld [vmem:[%s1171_s17 + $0xc0] sm:$0xff]  ;;  %v518_v62 = vadd.f32 %v486_v50, %v454_v45  ;;  %v456_v63 = vmul.f32 0.2, %v424_v54  ;;  %v393_v1 = vmul.f32 0.3, %v361_v60  ;;  %549 = vst [vmem:[%s1187_s22 + $0xa0] sm:$0xff] %v517_v55 }
  0x9a   : > { %v519_v3 = vadd.f32 %v487_v56, %v455_v51  ;;  %v488_v4 = vadd.f32 %v392_v58, %v328_v57  ;;  %v457_v5 = vmul.f32 0.2, %v425_v61  ;;  %v330_v6 = vmul.f32 0.5, %v298_v2  ;;  %v362_v7 = vld [vmem:[%s1162_s9 + $0xc8] sm:$0xff]  ;;  %v299_v9 = vld [vmem:[%s1154_s28 + $0xd0] sm:$0xff]  ;;  %v300_v18 = vld [vmem:[%s1154_s28 + $0xd8] sm:$0xff] }
  0x9b   : > { %v426_v8 = vld [vmem:[%s1171_s17 + $0xc8] sm:$0xff]  ;;  %550 = vst [vmem:[%s1187_s22 + $0xa8] sm:$0xff] %v518_v62  ;;  %v489_v10 = vadd.f32 %v393_v1, %v329_v0  ;;  %v394_v11 = vmul.f32 0.3, %v362_v7  ;;  %v331_v13 = vmul.f32 0.5, %v299_v9  ;;  %v363_v14 = vld [vmem:[%s1162_s9 + $0xd0] sm:$0xff] }
  0x9c   : > { %v458_v12 = vmul.f32 0.2, %v426_v8  ;;  %551 = vst [vmem:[%s1187_s22 + $0xb0] sm:$0xff] %v519_v3  ;;  %v520_v15 = vadd.f32 %v488_v4, %v456_v63  ;;  %v395_v16 = vmul.f32 0.3, %v363_v14  ;;  %v427_v17 = vld [vmem:[%s1171_s17 + $0xd0] sm:$0xff] }
  0x9d   : > { %v364_v19 = vld [vmem:[%s1162_s9 + $0xd8] sm:$0xff]  ;;  %v521_v20 = vadd.f32 %v489_v10, %v457_v5  ;;  %v490_v21 = vadd.f32 %v394_v11, %v330_v6  ;;  %v459_v22 = vmul.f32 0.2, %v427_v17  ;;  %v332_v23 = vmul.f32 0.5, %v300_v18  ;;  %v301_v25 = vld [vmem:[%s1154_s28 + $0xe0] sm:$0xff]  ;;  %v302_v35 = vld [vmem:[%s1154_s28 + $0xe8] sm:$0xff] }
  0x9e   : > { %v428_v24 = vld [vmem:[%s1171_s17 + $0xd8] sm:$0xff]  ;;  %v365_v26 = vld [vmem:[%s1162_s9 + $0xe0] sm:$0xff]  ;;  %552 = vst [vmem:[%s1187_s22 + $0xb8] sm:$0xff] %v520_v15  ;;  %v491_v27 = vadd.f32 %v395_v16, %v331_v13  ;;  %v396_v28 = vmul.f32 0.3, %v364_v19  ;;  %v333_v30 = vmul.f32 0.5, %v301_v25 }
  0x9f   : > { %v460_v29 = vmul.f32 0.2, %v428_v24  ;;  %v429_v31 = vld [vmem:[%s1171_s17 + $0xe0] sm:$0xff]  ;;  %553 = vst [vmem:[%s1187_s22 + $0xc0] sm:$0xff] %v521_v20  ;;  %v522_v32 = vadd.f32 %v490_v21, %v458_v12  ;;  %v397_v33 = vmul.f32 0.3, %v365_v26 }
  0xa0   : > { %v461_v34 = vmul.f32 0.2, %v429_v31  ;;  %v366_v36 = vld [vmem:[%s1162_s9 + $0xe8] sm:$0xff]  ;;  %v523_v37 = vadd.f32 %v491_v27, %v459_v22  ;;  %v492_v38 = vadd.f32 %v396_v28, %v332_v23  ;;  %v334_v39 = vmul.f32 0.5, %v302_v35  ;;  %v303_v42 = vld [vmem:[%s1154_s28 + $0xf0] sm:$0xff]  ;;  %v304_v52 = vld [vmem:[%s1154_s28 + $0xf8] sm:$0xff] }
  0xa1   : > { %v398_v40 = vmul.f32 0.3, %v366_v36  ;;  %v430_v41 = vld [vmem:[%s1171_s17 + $0xe8] sm:$0xff]  ;;  %v367_v43 = vld [vmem:[%s1162_s9 + $0xf0] sm:$0xff]  ;;  %554 = vst [vmem:[%s1187_s22 + $0xc8] sm:$0xff] %v522_v32  ;;  %v493_v44 = vadd.f32 %v397_v33, %v333_v30  ;;  %v335_v46 = vmul.f32 0.5, %v303_v42 }
  0xa2   : > { %v462_v45 = vmul.f32 0.2, %v430_v41  ;;  %v399_v47 = vmul.f32 0.3, %v367_v43  ;;  %v431_v48 = vld [vmem:[%s1171_s17 + $0xf0] sm:$0xff]  ;;  %555 = vst [vmem:[%s1187_s22 + $0xd0] sm:$0xff] %v523_v37  ;;  %v524_v49 = vadd.f32 %v492_v38, %v460_v29 }
  0xa3   : > { %v494_v50 = vadd.f32 %v398_v40, %v334_v39  ;;  %v463_v51 = vmul.f32 0.2, %v431_v48  ;;  %v368_v53 = vld [vmem:[%s1162_s9 + $0xf8] sm:$0xff]  ;;  %v525_v55 = vadd.f32 %v493_v44, %v461_v34  ;;  %v336_v57 = vmul.f32 0.5, %v304_v52  ;;  %s945_s5 = smov [#allocation8]  }
  0xa4   : > { %v432_v54 = vld [vmem:[%s1171_s17 + $0xf8] sm:$0xff]  ;;  %v495_v56 = vadd.f32 %v399_v47, %v335_v46  ;;  %v400_v58 = vmul.f32 0.3, %v368_v53  ;;  %556 = vst [vmem:[%s1187_s22 + $0xd8] sm:$0xff] %v524_v49  ;;  %s874_s26 = sshll.u32 %s945_s5, 4  ;;  %s875_s26 = int_to_ptr.vmem [resolvable:$false] %s874_s26 }
  0xa5   : > { %v526_v59 = vadd.f32 %v494_v50, %v462_v45  ;;  %v464_v60 = vmul.f32 0.2, %v432_v54  ;;  %557 = vst [vmem:[%s1187_s22 + $0xe0] sm:$0xff] %v525_v55  ;;  %s876_s27 = scalar_lea.vmem %s875_s26, 8192  ;;  %p877_p0 = scmp.lt.s32.totalorder %s1307_s25, %s875_s26 }
  0xa6   : > { %v527_v61 = vadd.f32 %v495_v56, %v463_v51  ;;  %v496_v62 = vadd.f32 %v400_v58, %v336_v57  ;;  %p878_p2 = scmp.lt.s32.totalorder %s876_s27, %s870_s6 }
  0xa7   : > { %558 = vst [vmem:[%s1187_s22 + $0xe8] sm:$0xff] %v526_v59 }
  0xa8   : > { %559 = vst [vmem:[%s1187_s22 + $0xf0] sm:$0xff] %v527_v61  ;;  %v528_v63 = vadd.f32 %v496_v62, %v464_v60  ;;  %p879_p11 = por %p878_p2, %p877_p0 }
  0xaa   : > { %560 = vst [vmem:[%s1187_s22 + $0xf8] sm:$0xff] %v528_v63  ;;  %p880_p6 = pnand %p879_p11, %p873_p9 }
  0xac   : > { %883 = shalt.err (!%p880_p6)
}
  0xad   : > { %s884_s7 = scalar_lea.hbm %s1305_s30, 4096  ;;  %s888_s10 = scalar_lea.hbm %s1354_s3, 16384 }
  0xae   : > { %p885_p13 = scmp.ne.s32.totalorder %s1305_s30, %s884_s7  ;;  %p889_p4 = scmp.lt.s32.totalorder %s1305_s30, %s1354_s3 }
  0xaf   : > { %p890_p1 = scmp.lt.s32.totalorder %s888_s10, %s884_s7 }
  0xb0   : > { %p886_p3 = pnand %p885_p13, %p1376_p7 }
  0xb1   : > { %p891_p5 = por %p890_p1, %p889_p4 }
  0xb2   : > { %p887_p10 = pneg %p886_p3 }
  0xb4   : > { %p892_p12 = pnand %p891_p5, %p887_p10 }
  0xb6   : > { %895 = shalt.err (!%p892_p12)
}
  0xb7   : > { %s946_s29 = smov 2048   ;;  %s947_s9 = smov 128  }
  0xb8   : > { %732 = dma.vmem_to_hbm [thread:$0]  (%p1376_p7), %s1307_s25, 4096, %s1305_s30, %s562_s16, %s946_s29, %s946_s29, %s947_s9  }
  0xb9 PF: > { %p749_p8 = scmp.ge.s32.totalorder %s938_s15, 2  ;;  %s591_s17 = sand.u32 1, %s926_s12  }
  0xba   : > { %p1377_p9 = scmp.ne.s32.totalorder %s1365_s24, 0  ;;  %s592_s22 = scalar_lea.sflag [#allocation4], %s591_s17 }
  0xbc   : > { %p745_p0 = pnand %p749_p8, %p1377_p9 }
  0xbe   : > { %p746_p2 = pneg %p745_p0 }
  0xc0   : > { %921 = dma.done.wait (%p746_p2), %s592_s22, 4096  }
  0xc1   : > { %923 = vsyncadd (%p746_p2), %s592_s22, 4294963200  ;;  %p19_p11 = scmp.ge.s32.totalorder %s993_s18, 6   ;;  %s1378_s12 = smov %s930_s13 }
  0xc2   : > { %s1379_s13 = smov %s934_s14  ;;  %s1380_s14 = smov %s1005_s21 }
  0xc3   : > { %s1381_s15 = smov %s993_s18  ;;  %21 = sbr.rel (!%p19_p11) target bundleno = 10 (0xa), region = 101 }
  0xc8   :  { %597 = vsyncpa [#allocation3], 1 }
  0xc9   :  { %599 = vsyncpa [#allocation3 + $0x1], 1 }
  0xca   :  { %600 = vsyncpa [#allocation6], 1 }
  0xcb   :  { %602 = vsyncpa [#allocation6 + $0x1], 1 }
  0xcc   :  { %603 = vsyncpa [#allocation4], 1 }
  0xcd   :  { %605 = vsyncpa [#allocation4 + $0x1], 1 }

</bundles_post_ra>
